<compile_context>
chip_gen: v5e
topology: v5e:2x2
jax: 0.10.0
libtpu: 0.0.40
codegen_flags: <defaults>
</compile_context>

<pallas_src>
import math
import functools

import jax
import jax.numpy as jnp
from jax import lax
from jax.experimental import pallas as pl
from jax.experimental.pallas import tpu as pltpu


_VMEM_LIMIT = 48 * 1024 * 1024  # explicit scoped-VMEM budget (safe on v5e/v6e/v7x)


def _pick_tile(n: int, preferred: int = 256) -> int:
    """Largest power-of-two tile <= preferred dividing n; fall back to full n."""
    t = preferred
    while t >= 8:
        if n % t == 0:
            return t
        t //= 2
    return n


# ---------------- projection (+ head split) kernel: x @ W + b -----------------
def _proj_split_kernel(x_ref, w_ref, b_ref, o_ref, *, num_heads, d_k):
    x = x_ref[0].astype(jnp.bfloat16)                       # (tr, D)
    xp = jnp.dot(x, w_ref[...], preferred_element_type=jnp.float32) + b_ref[...]
    for h in range(num_heads):                               # unrolled, static
        o_ref[0, h] = xp[:, h * d_k:(h + 1) * d_k].astype(o_ref.dtype)


def _project_to_heads(x, w_bf16, b, *, num_heads, d_k, tile):
    B, S, D = x.shape
    grid = (B, S // tile)
    kernel = functools.partial(_proj_split_kernel, num_heads=num_heads, d_k=d_k)
    flops = 2 * B * S * D * D
    bytes_accessed = int(x.size * x.dtype.itemsize + w_bf16.size * 2
                         + b.size * 4 + B * num_heads * S * d_k * 2)
    return pl.pallas_call(
        kernel,
        out_shape=jax.ShapeDtypeStruct((B, num_heads, S, d_k), jnp.bfloat16),
        grid_spec=pltpu.PrefetchScalarGridSpec(
            num_scalar_prefetch=0,
            grid=grid,
            in_specs=[
                pl.BlockSpec((1, tile, D), lambda bb, i: (bb, i, 0)),   # x tile
                pl.BlockSpec((D, D), lambda bb, i: (0, 0)),             # W (resident)
                pl.BlockSpec((1, D), lambda bb, i: (0, 0)),             # bias
            ],
            out_specs=pl.BlockSpec((1, num_heads, tile, d_k),
                                   lambda bb, i: (bb, 0, i, 0)),
        ),
        compiler_params=pltpu.CompilerParams(
            dimension_semantics=("parallel", "parallel"),
            vmem_limit_bytes=_VMEM_LIMIT),
        cost_estimate=pl.CostEstimate(flops=flops, transcendentals=0,
                                      bytes_accessed=bytes_accessed),
    )(x, w_bf16, b)


# -------------------- flash attention (online softmax) kernel -----------------
def _flash_attn_kernel(q_ref, k_ref, v_ref, o_ref, m_sc, l_sc, acc_sc, *, scale):
    j = pl.program_id(3)

    @pl.when(j == 0)
    def _():
        m_sc[...] = jnp.full(m_sc.shape, -jnp.inf, m_sc.dtype)
        l_sc[...] = jnp.zeros(l_sc.shape, l_sc.dtype)
        acc_sc[...] = jnp.zeros(acc_sc.shape, acc_sc.dtype)

    q = q_ref[0, 0]                                          # (tq, d_k) bf16
    k = k_ref[0, 0]                                          # (tk, d_k) bf16
    v = v_ref[0, 0]                                          # (tk, d_k) bf16

    # QK^T without materializing a transpose: contract last dims of both.
    s = lax.dot_general(q, k, (((1,), (1,)), ((), ())),
                        preferred_element_type=jnp.float32) * scale  # (tq, tk) f32
    # TODO(synk): attention mask path (masked_fill(mask==0, -1e9)) not implemented; mask=None only.

    m_prev = m_sc[...]
    m_new = jnp.maximum(m_prev, jnp.max(s, axis=-1, keepdims=True))
    alpha = jnp.exp(m_prev - m_new)
    p = jnp.exp(s - m_new)                                   # f32 probabilities (unnormalized)
    # TODO(synk): training-mode dropout on attention probabilities (eval-mode identity here).
    l_sc[...] = alpha * l_sc[...] + jnp.sum(p, axis=-1, keepdims=True)
    acc_sc[...] = alpha * acc_sc[...] + jnp.dot(
        p.astype(jnp.bfloat16), v, preferred_element_type=jnp.float32)
    m_sc[...] = m_new

    @pl.when(j == pl.num_programs(3) - 1)
    def _():
        inv_l = pl.reciprocal(l_sc[...], approx=True)        # EUP, off the VALU path
        o_ref[0, 0] = (acc_sc[...] * inv_l).astype(o_ref.dtype)


def _flash_attention(qh, kh, vh, *, tq, tk):
    B, H, Sq, d_k = qh.shape
    Sk = kh.shape[2]
    scale = 1.0 / math.sqrt(d_k)
    grid = (B, H, Sq // tq, Sk // tk)
    kernel = functools.partial(_flash_attn_kernel, scale=scale)
    flops = 4 * B * H * Sq * Sk * d_k                        # QK^T + PV
    transcendentals = B * H * Sq * Sk                        # exp
    bytes_accessed = int((qh.size + kh.size + vh.size) * 2 + B * H * Sq * d_k * 2)
    return pl.pallas_call(
        kernel,
        out_shape=jax.ShapeDtypeStruct((B, H, Sq, d_k), jnp.bfloat16),
        grid_spec=pltpu.PrefetchScalarGridSpec(
            num_scalar_prefetch=0,
            grid=grid,
            in_specs=[
                pl.BlockSpec((1, 1, tq, d_k), lambda b, h, i, j: (b, h, i, 0)),
                pl.BlockSpec((1, 1, tk, d_k), lambda b, h, i, j: (b, h, j, 0)),
                pl.BlockSpec((1, 1, tk, d_k), lambda b, h, i, j: (b, h, j, 0)),
            ],
            out_specs=pl.BlockSpec((1, 1, tq, d_k), lambda b, h, i, j: (b, h, i, 0)),
            scratch_shapes=[
                pltpu.VMEM((tq, 1), jnp.float32),     # running max m
                pltpu.VMEM((tq, 1), jnp.float32),     # running denom l
                pltpu.VMEM((tq, d_k), jnp.float32),   # running context acc
            ],
        ),
        compiler_params=pltpu.CompilerParams(
            dimension_semantics=("parallel", "parallel", "parallel", "arbitrary"),
            vmem_limit_bytes=_VMEM_LIMIT),
        cost_estimate=pl.CostEstimate(flops=flops, transcendentals=transcendentals,
                                      bytes_accessed=bytes_accessed),
    )(qh, kh, vh)


# ------------------------- output projection kernel ---------------------------
def _out_proj_kernel(ctx_ref, wo_ref, bo_ref, o_ref, *, num_heads):
    tq = ctx_ref.shape[2]
    D = o_ref.shape[2]
    acc = jnp.zeros((tq, D), jnp.float32)
    # concat(heads) @ Wo  ==  sum_h ctx_h @ Wo[h*d_k:(h+1)*d_k, :]  (no lane concat)
    for h in range(num_heads):
        acc = acc + jnp.dot(ctx_ref[0, h], wo_ref[h],
                            preferred_element_type=jnp.float32)
    o_ref[0] = (acc + bo_ref[...]).astype(o_ref.dtype)       # lane-dense (tq, D) write


def _output_projection(ctx, wo3_bf16, bo, *, tile, out_dtype):
    B, H, Sq, d_k = ctx.shape
    D = H * d_k
    grid = (B, Sq // tile)
    kernel = functools.partial(_out_proj_kernel, num_heads=H)
    flops = 2 * B * Sq * D * D
    bytes_accessed = int(ctx.size * 2 + wo3_bf16.size * 2 + bo.size * 4
                         + B * Sq * D * 4)
    return pl.pallas_call(
        kernel,
        out_shape=jax.ShapeDtypeStruct((B, Sq, D), out_dtype),
        grid_spec=pltpu.PrefetchScalarGridSpec(
            num_scalar_prefetch=0,
            grid=grid,
            in_specs=[
                pl.BlockSpec((1, H, tile, d_k), lambda bb, i: (bb, 0, i, 0)),
                pl.BlockSpec((H, d_k, D), lambda bb, i: (0, 0, 0)),      # Wo (resident)
                pl.BlockSpec((1, D), lambda bb, i: (0, 0)),              # bias
            ],
            out_specs=pl.BlockSpec((1, tile, D), lambda bb, i: (bb, i, 0)),
        ),
        compiler_params=pltpu.CompilerParams(
            dimension_semantics=("parallel", "parallel"),
            vmem_limit_bytes=_VMEM_LIMIT),
        cost_estimate=pl.CostEstimate(flops=flops, transcendentals=0,
                                      bytes_accessed=bytes_accessed),
    )(ctx, wo3_bf16, bo)


# --------------------------------- wrapper ------------------------------------
def multi_head_attention_forward(q, k, v, params, *, num_heads: int, mask=None):
    """q: (B, Sq, D), k/v: (B, Sk, D) float32.
    params = (wq, bq, wk, bk, wv, bv, wo, bo); weights (D, D) in `x @ W`
    orientation, biases (1, D)."""
    assert mask is None, "mask path not implemented (see TODO in kernel)"
    wq, bq, wk, bk, wv, bv, wo, bo = params

    B, Sq, D = q.shape
    Sk = k.shape[1]
    assert k.shape == v.shape, "k and v must have the same shape"
    assert D % num_heads == 0, "d_model must be divisible by num_heads"
    d_k = D // num_heads

    # bf16 MXU operands (cast weights once; activations cast per tile in-kernel).
    wq_bf = wq.astype(jnp.bfloat16)
    wk_bf = wk.astype(jnp.bfloat16)
    wv_bf = wv.astype(jnp.bfloat16)
    wo3_bf = wo.reshape(num_heads, d_k, D).astype(jnp.bfloat16)

    tq = _pick_tile(Sq, 256)
    tk = _pick_tile(Sk, 256)

    # 1) Projections + head split: computed exactly once per token.
    qh = _project_to_heads(q, wq_bf, bq, num_heads=num_heads, d_k=d_k, tile=tq)
    kh = _project_to_heads(k, wk_bf, bk, num_heads=num_heads, d_k=d_k, tile=tk)
    vh = _project_to_heads(v, wv_bf, bv, num_heads=num_heads, d_k=d_k, tile=tk)

    # 2) Flash attention over K/V tiles (online softmax, bounded VMEM).
    ctx = _flash_attention(qh, kh, vh, tq=tq, tk=tk)

    # 3) Output projection back to (B, Sq, D), lane-dense output.
    return _output_projection(ctx, wo3_bf, bo, tile=tq, out_dtype=q.dtype)


# ---------------------------- pure-JAX reference ------------------------------
def mha_reference(q, k, v, params, num_heads):
    wq, bq, wk, bk, wv, bv, wo, bo = params
    B, Sq, D = q.shape
    Sk = k.shape[1]
    d_k = D // num_heads
    qp = q @ wq + bq
    kp = k @ wk + bk
    vp = v @ wv + bv
    qh = qp.reshape(B, Sq, num_heads, d_k).transpose(0, 2, 1, 3)
    kh = kp.reshape(B, Sk, num_heads, d_k).transpose(0, 2, 1, 3)
    vh = vp.reshape(B, Sk, num_heads, d_k).transpose(0, 2, 1, 3)
    scores = jnp.einsum("bhqd,bhkd->bhqk", qh, kh) / math.sqrt(d_k)
    probs = jax.nn.softmax(scores, axis=-1)
    ctx = jnp.einsum("bhqk,bhkd->bhqd", probs, vh)
    ctx = ctx.transpose(0, 2, 1, 3).reshape(B, Sq, D)
    return ctx @ wo + bo


if __name__ == "__main__":
    # Small shapes consistent with the module: batch=2, seq=8, d_model=32, heads=4.
    B, S, D, H = 2, 8, 32, 4

    key = jax.random.PRNGKey(0)
    ks = jax.random.split(key, 11)
    q = jax.random.normal(ks[0], (B, S, D), dtype=jnp.float32)
    k = jax.random.normal(ks[1], (B, S, D), dtype=jnp.float32)
    v = jax.random.normal(ks[2], (B, S, D), dtype=jnp.float32)

    bound = 1.0 / math.sqrt(D)
    wq = jax.random.uniform(ks[3], (D, D), jnp.float32, -bound, bound)
    wk = jax.random.uniform(ks[4], (D, D), jnp.float32, -bound, bound)
    wv = jax.random.uniform(ks[5], (D, D), jnp.float32, -bound, bound)
    wo = jax.random.uniform(ks[6], (D, D), jnp.float32, -bound, bound)
    bq = jax.random.uniform(ks[7], (1, D), jnp.float32, -bound, bound)
    bk = jax.random.uniform(ks[8], (1, D), jnp.float32, -bound, bound)
    bv = jax.random.uniform(ks[9], (1, D), jnp.float32, -bound, bound)
    bo = jax.random.uniform(ks[10], (1, D), jnp.float32, -bound, bound)
    params = (wq, bq, wk, bk, wv, bv, wo, bo)

    out = multi_head_attention_forward(q, k, v, params, num_heads=H)
    out = jax.block_until_ready(out)
    assert out.shape == (B, S, D)

    ref = mha_reference(q, k, v, params, H)
    max_err = float(jnp.max(jnp.abs(out - ref)))
    # bf16 MXU operands (per perf review) -> tolerance relaxed vs pure-f32 reference.
    assert jnp.allclose(out, ref, atol=3e-2, rtol=3e-2), f"mismatch, max abs err={max_err}"

    print("KERNEL_OK")
</pallas_src>

<mosaic_0001>
module attributes {stable_mosaic.version = 11 : i64} {
  func.func @_proj_split_kernel(%arg0: i32, %arg1: i32, %arg2: memref<1x8x32xf32, #tpu.memory_space<vmem>>, %arg3: memref<32x32xbf16, #tpu.memory_space<vmem>>, %arg4: memref<1x32xf32, #tpu.memory_space<vmem>>, %arg5: memref<1x4x8x8xbf16, #tpu.memory_space<vmem>>) attributes {dimension_semantics = [#tpu.dimension_semantics<parallel>, #tpu.dimension_semantics<parallel>], iteration_bounds = array<i64: 2, 1>, scalar_prefetch = 0 : i64, scratch_operands = 0 : i64, tpu.core_type = #tpu.core_type<tc>, window_params = [{transform_indices = @transform_0, window_bounds = array<i64: 1, 8, 32>}, {pipeline_mode = #tpu.pipeline_mode<synchronous>, transform_indices = @transform_1, window_bounds = array<i64: 32, 32>}, {pipeline_mode = #tpu.pipeline_mode<synchronous>, transform_indices = @transform_2, window_bounds = array<i64: 1, 32>}, {transform_indices = @transform_3, window_bounds = array<i64: 1, 4, 8, 8>}]} {
    %c0 = arith.constant 0 : index
    %c0_0 = arith.constant 0 : index
    %c0_1 = arith.constant 0 : index
    %0 = vector.load %arg2[%c0, %c0_0, %c0_1] : memref<1x8x32xf32, #tpu.memory_space<vmem>>, vector<1x8x32xf32>
    %1 = vector.shape_cast %0 : vector<1x8x32xf32> to vector<8x32xf32>
    %2 = arith.truncf %1 : vector<8x32xf32> to vector<8x32xbf16>
    %c0_2 = arith.constant 0 : index
    %c0_3 = arith.constant 0 : index
    %3 = vector.load %arg3[%c0_2, %c0_3] : memref<32x32xbf16, #tpu.memory_space<vmem>>, vector<32x32xbf16>
    %cst = arith.constant dense<0.000000e+00> : vector<8x32xf32>
    %4 = tpu.matmul %2, %3, %cst {dimension_numbers = #tpu.dot_dimension_numbers<[1], [0], [0], [1], [0, 0, 1, 1], [], []>} : vector<8x32xbf16>, vector<32x32xbf16>, vector<8x32xf32> -> vector<8x32xf32>
    %c0_4 = arith.constant 0 : index
    %c0_5 = arith.constant 0 : index
    %5 = vector.load %arg4[%c0_4, %c0_5] : memref<1x32xf32, #tpu.memory_space<vmem>>, vector<1x32xf32>
    %6 = vector.broadcast %5 : vector<1x32xf32> to vector<8x32xf32>
    %7 = arith.addf %4, %6 : vector<8x32xf32>
    %8 = vector.extract_strided_slice %7 {offsets = [0, 0], sizes = [8, 8], strides = [1, 1]} : vector<8x32xf32> to vector<8x8xf32>
    %9 = arith.truncf %8 : vector<8x8xf32> to vector<8x8xbf16>
    %c0_6 = arith.constant 0 : index
    %c0_7 = arith.constant 0 : index
    %c0_8 = arith.constant 0 : index
    %c0_9 = arith.constant 0 : index
    %10 = vector.load %arg5[%c0_6, %c0_7, %c0_8, %c0_9] : memref<1x4x8x8xbf16, #tpu.memory_space<vmem>>, vector<1x1x8x8xbf16>
    %11 = vector.shape_cast %10 : vector<1x1x8x8xbf16> to vector<8x8xbf16>
    %12 = vector.shape_cast %9 : vector<8x8xbf16> to vector<1x1x8x8xbf16>
    tpu.vector_store %arg5[%c0_6, %c0_7, %c0_8, %c0_9], %12 {strides = array<i32>} : memref<1x4x8x8xbf16, #tpu.memory_space<vmem>>, vector<1x1x8x8xbf16>,
    %13 = vector.extract_strided_slice %7 {offsets = [0, 8], sizes = [8, 8], strides = [1, 1]} : vector<8x32xf32> to vector<8x8xf32>
    %14 = arith.truncf %13 : vector<8x8xf32> to vector<8x8xbf16>
    %c0_10 = arith.constant 0 : index
    %c1 = arith.constant 1 : index
    %c0_11 = arith.constant 0 : index
    %c0_12 = arith.constant 0 : index
    %15 = vector.load %arg5[%c0_10, %c1, %c0_11, %c0_12] : memref<1x4x8x8xbf16, #tpu.memory_space<vmem>>, vector<1x1x8x8xbf16>
    %16 = vector.shape_cast %15 : vector<1x1x8x8xbf16> to vector<8x8xbf16>
    %17 = vector.shape_cast %14 : vector<8x8xbf16> to vector<1x1x8x8xbf16>
    tpu.vector_store %arg5[%c0_10, %c1, %c0_11, %c0_12], %17 {strides = array<i32>} : memref<1x4x8x8xbf16, #tpu.memory_space<vmem>>, vector<1x1x8x8xbf16>,
    %18 = vector.extract_strided_slice %7 {offsets = [0, 16], sizes = [8, 8], strides = [1, 1]} : vector<8x32xf32> to vector<8x8xf32>
    %19 = arith.truncf %18 : vector<8x8xf32> to vector<8x8xbf16>
    %c0_13 = arith.constant 0 : index
    %c2 = arith.constant 2 : index
    %c0_14 = arith.constant 0 : index
    %c0_15 = arith.constant 0 : index
    %20 = vector.load %arg5[%c0_13, %c2, %c0_14, %c0_15] : memref<1x4x8x8xbf16, #tpu.memory_space<vmem>>, vector<1x1x8x8xbf16>
    %21 = vector.shape_cast %20 : vector<1x1x8x8xbf16> to vector<8x8xbf16>
    %22 = vector.shape_cast %19 : vector<8x8xbf16> to vector<1x1x8x8xbf16>
    tpu.vector_store %arg5[%c0_13, %c2, %c0_14, %c0_15], %22 {strides = array<i32>} : memref<1x4x8x8xbf16, #tpu.memory_space<vmem>>, vector<1x1x8x8xbf16>,
    %23 = vector.extract_strided_slice %7 {offsets = [0, 24], sizes = [8, 8], strides = [1, 1]} : vector<8x32xf32> to vector<8x8xf32>
    %24 = arith.truncf %23 : vector<8x8xf32> to vector<8x8xbf16>
    %c0_16 = arith.constant 0 : index
    %c3 = arith.constant 3 : index
    %c0_17 = arith.constant 0 : index
    %c0_18 = arith.constant 0 : index
    %25 = vector.load %arg5[%c0_16, %c3, %c0_17, %c0_18] : memref<1x4x8x8xbf16, #tpu.memory_space<vmem>>, vector<1x1x8x8xbf16>
    %26 = vector.shape_cast %25 : vector<1x1x8x8xbf16> to vector<8x8xbf16>
    %27 = vector.shape_cast %24 : vector<8x8xbf16> to vector<1x1x8x8xbf16>
    tpu.vector_store %arg5[%c0_16, %c3, %c0_17, %c0_18], %27 {strides = array<i32>} : memref<1x4x8x8xbf16, #tpu.memory_space<vmem>>, vector<1x1x8x8xbf16>,
    return
  }
  func.func @transform_0(%arg0: i32, %arg1: i32) -> (i32, i32, i32) {
    %c0_i32 = arith.constant 0 : i32
    %c0_i32_0 = arith.constant 0 : i32
    return %arg0, %arg1, %c0_i32 : i32, i32, i32
  }
  func.func @transform_1(%arg0: i32, %arg1: i32) -> (i32, i32) {
    %c0_i32 = arith.constant 0 : i32
    %c0_i32_0 = arith.constant 0 : i32
    %c0_i32_1 = arith.constant 0 : i32
    return %c0_i32, %c0_i32_0 : i32, i32
  }
  func.func @transform_2(%arg0: i32, %arg1: i32) -> (i32, i32) {
    %c0_i32 = arith.constant 0 : i32
    %c0_i32_0 = arith.constant 0 : i32
    %c0_i32_1 = arith.constant 0 : i32
    return %c0_i32, %c0_i32_0 : i32, i32
  }
  func.func @transform_3(%arg0: i32, %arg1: i32) -> (i32, i32, i32, i32) {
    %c0_i32 = arith.constant 0 : i32
    %c0_i32_0 = arith.constant 0 : i32
    %c0_i32_1 = arith.constant 0 : i32
    return %arg0, %c0_i32, %arg1, %c0_i32_0 : i32, i32, i32, i32
  }
}

</mosaic_0001>

<bundles_post_ra>
// kernel: tpu_custom_call.1
= control target key start
LH: loop header
LB: loop body
LE: loop exit
PB: predicated region body
PF: predicated region fallthrough
CT: control target
= control target key end

     0   :  { %8 = vsyncpa [#allocation3], 0  ;;  %s831_s0 = inlined_call_operand.hbm [shape: f32[2,8,32], index: 0, kind: input, shape index: {}]   ;;  %s832_s1 = inlined_call_operand.hbm [shape: bf16[32,32], index: 1, kind: input, shape index: {}]   ;;  %s833_s2 = inlined_call_operand.vmem [shape: f32[1,32], index: 2, kind: input, shape index: {}]   ;;  %s834_s3 = inlined_call_operand.hbm [shape: bf16[2,4,8,8], index: 3, kind: output, shape index: {}]  }
   0x1   :  { %10 = vsyncpa [#allocation3 + $0x1], 0 }
   0x2   :  { %11 = vsyncpa [#allocation6], 0 }
   0x3   :  { %12 = vsyncpa [#allocation4], 0 }
   0x4   :  { %14 = vsyncpa [#allocation4 + $0x1], 0  ;;  %s680_s12 = smov 0   ;;  %s682_s13 = smov 0  }
   0x5   :  { %s684_s14 = smov 0   ;;  %s686_s15 = smov 0  }
   0x6   :  { %s688_s16 = smov 0   ;;  %s690_s17 = smov 0  }
   0x7 LB: > { %s392_s18 = sadd.s32 4294967295, %s650_s17   ;;  %p394_p0 = scmp.ge.s32.totalorder %s650_s17, 1  ;;  %s650_s17 = sphi %s690_s17, %s20_s17   ;;  %s646_s16 = sphi %s688_s16, %s845_s16   ;;  %s642_s15 = sphi %s686_s15, %s844_s15   ;;  %s638_s14 = sphi %s684_s14, %s843_s14   ;;  %s634_s13 = sphi %s682_s13, %s842_s13   ;;  %s630_s12 = sphi %s680_s12, %s841_s12  }
   0x8   : > { %p712_p1 = scmp.eq.s32.totalorder %s392_s18, 0  ;;  %p135_p2 = scmp.lt.s32.totalorder %s650_s17, 3 }
   0x9   : > { %s146_s22 = sshll.u32 %s832_s1, 4  ;;  %s652_s24 = smov [#allocation5]   ;;  %s147_s22 = int_to_ptr.hbm [resolvable:$true] %s146_s22 }
   0xa   : > { %p720_p3 = pnand %p394_p0, %p135_p2  ;;  %s148_s25 = sshll.u32 %s652_s24, 4  ;;  %s149_s25 = int_to_ptr.vmem [resolvable:$true] %s148_s25 }
   0xb   : > { %p396_p6 = scmp.ge.s32.totalorder %s650_s17, 2  ;;  %s653_s26 = smov 64  }
   0xc   : > { %p431_p4 = pneg %p720_p3  ;;  %s654_s27 = smov 4  }
   0xd   : > { %s393_s28 = sadd.s32 4294967294, %s650_s17   ;;  %s32_s29 = sadd.s32 1, %s646_s16 }
   0xe   : > { %p432_p5 = pnand %p431_p4, %p712_p1  ;;  %s41_s30 = sadd.s32 1, %s638_s14 }
   0xf   : > { %p34_p7 = scmp.ge.s32.totalorder %s32_s29, 2  ;;  %p48_p8 = scmp.ne.s32.totalorder %s638_s14, %s634_s13 }
  0x10   : > { %434 = dma.hbm_to_vmem [thread:$0]  (!%p432_p5), %s147_s22, 256, %s149_s25, [#allocation6], %s653_s26, %s653_s26, %s654_s27  }
  0x11   : > { %p49_p9 = scmp.eq.s32.totalorder %s650_s17, 0  ;;  %p54_p10 = scmp.ne.s32.totalorder %s634_s13, %s630_s12 }
  0x12   : > { %s847_s29 = smov (%p34_p7, %s32_s29), 0  ;;  %p122_p13 = scmp.eq.s32.totalorder %s392_s18, 1 }
  0x13   : > { %p739_p11 = por %p49_p9, %p48_p8  ;;  %p745_p12 = por %p712_p1, %p54_p10 }
  0x14   : > { %s36_s6 = ssub.s32 %s646_s16, %s847_s29  ;;  %p128_p2 = scmp.eq.s32.totalorder %s393_s28, 1 }
  0x15   : > { %p39_p0 = scmp.eq.s32.totalorder %s36_s6, 0  ;;  %p751_p4 = por %p122_p13, %p48_p8 }
  0x16   : > { %p444_p5 = scmp.lt.s32.totalorder %s650_s17, 2  ;;  %p759_p7 = por %p128_p2, %p54_p10 }
  0x17   : > { %s757_s8 = scalar_select %p39_p0, %s638_s14, %s41_s30  }
  0x18   : > { %s165_s10 = sand.u32 1, %s638_s14   ;;  %s398_s20 = sshll.u32 %s646_s16, 3 }
  0x19   : > { %s397_s11 = sshll.u32 %s165_s10, 3  ;;  %s174_s18 = scalar_lea.hbm %s831_s0, %s398_s20 }
  0x1a   : > { %s169_s24 = scalar_lea.vmem [#allocation2], %s397_s11  ;;  %s176_s26 = sshll.u32 %s174_s18, 4  ;;  %s177_s26 = int_to_ptr.hbm [resolvable:$true] %s176_s26 }
  0x1b   : > { %s178_s25 = sshll.u32 %s169_s24, 4  ;;  %p436_p8 = pnand %p444_p5, %p739_p11  ;;  %s179_s25 = int_to_ptr.vmem [resolvable:$true] %s178_s25 }
  0x1c   : > { %s166_s27 = scalar_lea.sflag [#allocation3], %s165_s10  ;;  %187 = sbr.rel (%p720_p3) target bundleno = 301 (0x12d), region = 32 }
  0x1d   : > { %438 = dma.hbm_to_vmem [thread:$0]  (!%p436_p8), %s177_s26, 128, %s179_s25, %s166_s27  }
  0x1e   : > { %s773_s28 = sand.u32 (!%p720_p3), 1, %s634_s13  }
  0x1f   : > { %s400_s30 = sshll.u32 (!%p720_p3), %s773_s28, 3  ;;  %s190_s6 = scalar_lea.sflag (!%p720_p3), [#allocation3], %s773_s28 }
  0x20   : > { %s193_s11 = scalar_lea.vmem (!%p720_p3), [#allocation2], %s400_s30 }
  0x21   : > { %617 = dma.done.wait (%p745_p12), %s190_s6, 128  }
  0x22   : > { %619 = vsyncadd (%p745_p12), %s190_s6, 4294967168 }
  0x23   : > { %621 = dma.done.wait (%p712_p1), [#allocation6], 256  }
  0x24   : > { %623 = vsyncadd (%p712_p1), [#allocation6], 4294967040  ;;  %v421_v0 = vld [vmem:[#allocation5 + $0x8] sm:$0xff]  ;;  %v420_v1 = vld [vmem:[#allocation5] sm:$0xff]  ;;  %vm245_vm0 = vcmask 261120   ;;  %s402_s5 = sshll.u32 %s773_s28, 4 }
  0x25   : > { %255 = vmatpush.bf16.msra.mxu0 %v421_v0  ;;  %v223_v2 = vld [vmem:[%s193_s11] sm:$0xff]  ;;  %vm263_vm1 = vcmask 60416   ;;  %s655_s19 = smov 104   ;;  %s656_s10 = smov 120  }
  0x26   : > { %v224_v3 = vpack.c.bf16 %v223_v2, %v223_v2  ;;  %v503_v4 = vld [vmem:[%s833_s2] ss:$0 sm:$0xff]  ;;  %s221_s20 = scalar_lea.vmem [#allocation7], %s402_s5  ;;  %s657_s21 = smov 112  }
  0x27   : > { %s422_s22 = sshll.u32 %s642_s15, 4  ;;  %s295_s26 = sshll.u32 %s221_s20, 4  ;;  %s296_s26 = int_to_ptr.vmem [resolvable:$true] %s295_s26 }
  0x28   : > { %s294_s25 = scalar_lea.hbm %s834_s3, %s422_s22  ;;  %s282_s30 = scalar_lea.sflag [#allocation4], %s773_s28 }
  0x29   : > { %256 = vmatpush.bf16.msra.mxu0 %v420_v1  ;;  %s297_s27 = sshll.u32 %s294_s25, 4  ;;  %s584_s4 = scalar_lea.hbm %s834_s3, 32  ;;  %s298_s27 = int_to_ptr.hbm [resolvable:$true] %s297_s27 }
  0x2a   : > { %s578_s15 = sshra.s32 %s298_s27, 4  ;;  %s579_s15 = int_to_ptr.hbm [resolvable:$true] %s578_s15 }
  0x2b   : > { %s580_s6 = scalar_lea.hbm %s579_s15, 16  ;;  %p585_p10 = scmp.lt.s32.totalorder %s579_s15, %s834_s3 }
  0x2c   : > { %411 = vmatmul.msk.bf16.vlgmr.msra.gmra.mxu0 %vm245_vm0, %v224_v3  ;;  %p581_p1 = scmp.ne.s32.totalorder %s579_s15, %s580_s6  ;;  %p586_p11 = scmp.lt.s32.totalorder %s584_s4, %s580_s6 }
  0x2e   : > { %p582_p3 = pnand %p581_p1, %p751_p4  ;;  %p587_p12 = por %p586_p11, %p585_p10 }
  0x30   : > { %p583_p9 = pneg %p582_p3 }
  0x32   : > { %p588_p13 = pnand %p587_p12, %p583_p9 }
  0xa9   : > { %v258_v5 = vpop.f32.mrf.mxu0 }
  0xaa   : > { %v259_v6 = vadd.f32 %v503_v4, %v258_v5 }
  0xac   : > { %v262_v7 = vpack.c.bf16 %v259_v6, %v259_v6 }
  0xae   : > { %276 = vrot.lane.b32.xlu1 %v262_v7, %s655_s19  ;;  %266 = vrot.lane.b32.xlu0 %v262_v7, %s656_s10  ;;  %264 = vst.msk [vmem:[%s221_s20] sm:$0xf] %vm263_vm1, %v262_v7 }
  0xb1   : > { %v260_v8 = vpop.f32.mrf.mxu0 }
  0xb6   : > { %271 = vrot.lane.b32.xlu0 %v262_v7, %s657_s21 }
 0x120   : > { %v277_v9 = vpop.permute.xlu1 %276  ;;  %v267_v10 = vpop.permute.xlu0 %266 }
 0x121   : > { %414 = vst.msk [vmem:[%s221_s20 + $0xc] sm:$0xf] %vm263_vm1, %v277_v9 }
 0x122   : > { %412 = vst.msk [vmem:[%s221_s20 + $0x4] sm:$0xf] %vm263_vm1, %v267_v10 }
 0x128   : > { %v272_v11 = vpop.permute.xlu0 %271 }
 0x129   : > { %413 = vst.msk [vmem:[%s221_s20 + $0x8] sm:$0xf] %vm263_vm1, %v272_v11 }
 0x12a   : > { %591 = shalt.err (!%p588_p13)
}
 0x12b   : > { %s658_s28 = smov 64   ;;  %s659_s10 = smov 4  }
 0x12c   : > { %429 = dma.vmem_to_hbm [thread:$0]  (%p751_p4), %s296_s26, 256, %s298_s27, %s282_s30, %s658_s28, %s658_s28, %s659_s10  }
 0x12d PF: > { %s312_s20 = sand.u32 1, %s630_s12   ;;  %p440_p0 = pnand %p396_p6, %p759_p7 }
 0x12e   : > { %s313_s21 = scalar_lea.sflag [#allocation4], %s312_s20 }
 0x12f   : > { %p441_p2 = pneg %p440_p0 }
 0x131   : > { %625 = dma.done.wait (%p441_p2), %s313_s21, 256  }
 0x132   : > { %627 = vsyncadd (%p441_p2), %s313_s21, 4294967040  ;;  %s20_s17 = sadd.s32 1, %s650_s17   ;;  %s841_s12 = smov %s634_s13 }
 0x133   : > { %p17_p5 = scmp.ge.s32.totalorder %s20_s17, 4   ;;  %s842_s13 = smov %s638_s14 }
 0x134   : > { %s843_s14 = smov %s757_s8  ;;  %s844_s15 = smov %s646_s16 }
 0x135   : > { %s845_s16 = smov %s847_s29  ;;  %19 = sbr.rel (!%p17_p5) target bundleno = 7 (0x7), region = 84 }
 0x13a   :  { %319 = vsyncpa [#allocation3], 1 }
 0x13b   :  { %321 = vsyncpa [#allocation3 + $0x1], 1 }
 0x13c   :  { %322 = vsyncpa [#allocation6], 1 }
 0x13d   :  { %323 = vsyncpa [#allocation4], 1 }
 0x13e   :  { %325 = vsyncpa [#allocation4 + $0x1], 1 }

</bundles_post_ra>
